<compile_context>
chip_gen: v7x
topology: tpu7x:2x2x1
jax: 0.10.0
libtpu: 0.0.40
codegen_flags: <defaults>
</compile_context>

<pallas_src>
import jax
import jax.numpy as jnp
import numpy as np
from jax.experimental import pallas as pl
from jax.experimental.pallas import tpu as pltpu


def _cfg_editing_kernel(scalars_ref,  # SMEM f32[2]: c_in, image_cfg_scale (scalar prefetch)
                        z_ref,        # VMEM [C, blk]: latent block (native dtype)
                        ccc_ref,      # VMEM [C, blk]: cond  c_concat block
                        ucc_ref,      # VMEM [C, blk]: uncond c_concat block
                        wz_ref,       # VMEM [C, C]: w_z.T
                        wc_ref,       # VMEM [C, C]: w_c.T
                        b_ref,        # VMEM [C, 1]: bias column
                        ctx_ref,      # VMEM [C, 1]: pre-folded cross-attn/cond_scale column
                        o_ref):       # VMEM [C, blk]
    c_in = scalars_ref[0]
    image_cfg_scale = scalars_ref[1]

    # Cast after load so inputs travel over HBM in their native (possibly bf16) dtype.
    z = z_ref[...].astype(jnp.float32)
    cond_cc = ccc_ref[...].astype(jnp.float32)
    uncond_cc = ucc_ref[...].astype(jnp.float32)

    # Shared z-contraction computed once; two small MXU dots total per block.
    h_shared = jnp.dot(wz_ref[...], z, preferred_element_type=jnp.float32)
    b = b_ref[...]                                                    # [C, 1] broadcast
    h_cond = h_shared + jnp.dot(wc_ref[...], cond_cc,
                                preferred_element_type=jnp.float32) + b
    h_uncond = h_shared + jnp.dot(wc_ref[...], uncond_cc,
                                  preferred_element_type=jnp.float32) + b
    t_cond = jnp.tanh(h_cond)          # EUP
    t_uncond = jnp.tanh(h_uncond)

    # Algebraic CFG fold (valid only for this synthetic inner denoiser).
    result = (z * c_in
              + t_uncond
              + image_cfg_scale * (t_cond - t_uncond)
              + ctx_ref[...])
    o_ref[...] = result.astype(o_ref.dtype)


def _pick_block_hw(hw, max_lanes=8192):
    """Largest multiple-of-128 divisor of hw that is <= max_lanes (big blocks,
    ~0.35us/grid-step overhead makes tiny tiles a loss).  Falls back to the
    full extent when hw is not lane-aligned."""
    if hw % 128 != 0:
        return hw
    best = 128
    b = 128
    limit = min(hw, max_lanes)
    while b <= limit:
        if hw % b == 0:
            best = b
        b += 128
    return best


def prepare_prompt_constants(params, cond, uncond, cond_scale):
    """Denoising-loop-invariant constants (compute once per prompt, not per step)."""
    C = params["w_z"].shape[0]
    w_zT = jnp.asarray(params["w_z"], jnp.float32).T            # [C, C]
    w_cT = jnp.asarray(params["w_c"], jnp.float32).T            # [C, C]
    b_col = jnp.asarray(params["b"], jnp.float32).reshape(C, 1)  # [C, 1]

    w_cross = jnp.asarray(params["w_cross"], jnp.float32)
    cond_cross = cond["c_crossattn"][0][0].astype(jnp.float32)     # [S, E]
    uncond_cross = uncond["c_crossattn"][0][0].astype(jnp.float32)
    ctx_cond = jnp.mean(cond_cross, axis=0) @ w_cross              # [C]
    ctx_uncond = jnp.mean(uncond_cross, axis=0) @ w_cross
    cs = jnp.asarray(cond_scale, jnp.float32)
    ctx_base = (ctx_uncond + cs * (ctx_cond - ctx_uncond)).reshape(C, 1)
    return {"w_zT": w_zT, "w_cT": w_cT, "b_col": b_col, "ctx_base": ctx_base}


def cfg_editing_step(z, sigma, cond_concat, uncond_concat, consts,
                     image_cfg_scale=1.5):
    """One denoising step; `consts` comes from prepare_prompt_constants()."""
    _, C, H, W = z.shape
    HW = H * W
    out_dtype = z.dtype

    # Lane-dense [C, HW] views: free reshapes of contiguous NCHW, native dtype.
    z_chw = z[0].reshape(C, HW)
    cond_cc = cond_concat[0].reshape(C, HW)
    uncond_cc = uncond_concat[0].reshape(C, HW)

    # Per-step scalar math stays in XLA (once per step, not per element).
    sig = jnp.asarray(sigma, jnp.float32).reshape(-1)[0]
    c_in = jax.lax.rsqrt(sig * sig + 1.0)
    ctx_gain = sig / (sig + 1.0)
    ctx_add = (ctx_gain * consts["ctx_base"]).astype(jnp.float32)    # [C, 1]
    scalars = jnp.stack([c_in, jnp.asarray(image_cfg_scale, jnp.float32)])

    block_hw = _pick_block_hw(HW)
    grid = (HW // block_hw,)

    hw_spec = lambda: pl.BlockSpec((C, block_hw), lambda i, s: (0, i))
    w_spec = pl.BlockSpec((C, C), lambda i, s: (0, 0))
    col_spec = pl.BlockSpec((C, 1), lambda i, s: (0, 0))

    grid_spec = pltpu.PrefetchScalarGridSpec(
        num_scalar_prefetch=1,                 # scalars -> SMEM, first kernel arg
        grid=grid,
        in_specs=[hw_spec(), hw_spec(), hw_spec(),
                  w_spec, w_spec, col_spec, col_spec],
        out_specs=pl.BlockSpec((C, block_hw), lambda i, s: (0, i)),
    )

    out_chw = pl.pallas_call(
        _cfg_editing_kernel,
        out_shape=jax.ShapeDtypeStruct((C, HW), out_dtype),
        grid_spec=grid_spec,
        compiler_params=pltpu.CompilerParams(
            dimension_semantics=("parallel",)),   # v7x: 2 TCs split the HW axis
    )(scalars, z_chw, cond_cc, uncond_cc,
      consts["w_zT"], consts["w_cT"], consts["b_col"], ctx_add)

    return out_chw.reshape(C, H, W)[None]          # back to NCHW [1, C, H, W]


def cfg_editing_denoiser(z, sigma, cond, uncond, cond_scale,
                         image_cfg_scale=1.5, params=None,
                         mask=None, mask_noise=None, orig_latent=None):
    """Drop-in wrapper matching CFGEditingDenoiser.forward (mask path excluded).

    In a real denoising loop, call prepare_prompt_constants() once and
    cfg_editing_step() per step instead of this convenience wrapper.
    """
    # TODO(synk): mask_blend / sigma_to_t (mask is not None) path requires the
    # inner model's diffusion schedule; not implemented here.
    assert mask is None
    consts = prepare_prompt_constants(params, cond, uncond, cond_scale)
    return cfg_editing_step(z, sigma, cond["c_concat"][0], uncond["c_concat"][0],
                            consts, image_cfg_scale)


# ----------------------------- reference (pure JAX) -----------------------------

def _nchw_to_hwc_flat(x):
    # [1, C, H, W] -> [H*W, C]  (reference only)
    c = x.shape[1]
    return jnp.transpose(x[0], (1, 2, 0)).reshape(-1, c)


def _reference(z, sigma, cond, uncond, cond_scale, image_cfg_scale, params):
    """Pure-JAX reference: full, UNFOLDED 3-branch CFG math mirroring the module."""
    C, H, W = z.shape[1], z.shape[2], z.shape[3]
    z2 = _nchw_to_hwc_flat(z)
    cond_concat = _nchw_to_hwc_flat(cond["c_concat"][0])
    uncond_concat = _nchw_to_hwc_flat(uncond["c_concat"][0])
    cond_cross = cond["c_crossattn"][0][0]
    uncond_cross = uncond["c_crossattn"][0][0]
    sig = jnp.asarray(sigma, jnp.float32).reshape(-1)[0]

    def inner(cross, concat):
        h = z2 @ params["w_z"] + concat @ params["w_c"] + params["b"]
        ctx = jnp.mean(cross, axis=0, keepdims=True) @ params["w_cross"]
        return (z2 * jax.lax.rsqrt(sig * sig + 1.0)
                + jnp.tanh(h) + ctx * (sig / (sig + 1.0)))

    # cfg_cond: c_crossattn -> [cond, uncond, uncond]; c_concat -> [cond, cond, uncond]
    out_cond = inner(cond_cross, cond_concat)
    out_img_cond = inner(uncond_cross, cond_concat)
    out_uncond = inner(uncond_cross, uncond_concat)
    res = (out_uncond
           + cond_scale * (out_cond - out_img_cond)
           + image_cfg_scale * (out_img_cond - out_uncond))
    return jnp.transpose(res.reshape(H, W, C), (2, 0, 1))[None]


def init_params(C, E):
    k = jax.random.PRNGKey(42)
    k1, k2, k3, k4 = jax.random.split(k, 4)
    return {
        "w_z": (jax.random.normal(k1, (C, C), jnp.float32) * 0.2),
        "w_c": (jax.random.normal(k2, (C, C), jnp.float32) * 0.2),
        "b": (jax.random.normal(k3, (1, C), jnp.float32) * 0.05),
        "w_cross": (jax.random.normal(k4, (E, C), jnp.float32) * 0.1),
    }


if __name__ == "__main__":
    B, C, H, W = 1, 4, 16, 16   # forward requires batch == 1 (repeated to 3)
    S, E = 8, 32

    key = jax.random.PRNGKey(0)
    kz, kcc, kuc, kcx, kux = jax.random.split(key, 5)
    z = jax.random.normal(kz, (B, C, H, W), jnp.float32)
    sigma = jnp.array([2.5], jnp.float32)
    cond = {
        "c_crossattn": [jax.random.normal(kcx, (1, S, E), jnp.float32)],
        "c_concat": [jax.random.normal(kcc, (1, C, H, W), jnp.float32)],
    }
    uncond = {
        "c_crossattn": [jax.random.normal(kux, (1, S, E), jnp.float32)],
        "c_concat": [jax.random.normal(kuc, (1, C, H, W), jnp.float32)],
    }
    params = init_params(C, E)
    cond_scale = 7.5
    image_cfg_scale = 1.5

    # Hoisted path: per-prompt constants once, then the per-step kernel call.
    consts = prepare_prompt_constants(params, cond, uncond, cond_scale)
    out = cfg_editing_step(z, sigma, cond["c_concat"][0], uncond["c_concat"][0],
                           consts, image_cfg_scale)
    out = jax.block_until_ready(out)

    ref = _reference(z, sigma, cond, uncond, cond_scale, image_cfg_scale, params)
    np.testing.assert_allclose(np.asarray(out), np.asarray(ref),
                               rtol=2e-2, atol=2e-2)
    assert out.shape == (1, C, H, W)

    # Also exercise the module-signature drop-in wrapper.
    out2 = jax.block_until_ready(
        cfg_editing_denoiser(z, sigma, cond, uncond, cond_scale,
                             image_cfg_scale, params=params))
    np.testing.assert_allclose(np.asarray(out2), np.asarray(ref),
                               rtol=2e-2, atol=2e-2)
    print("KERNEL_OK")
</pallas_src>

<mosaic_0001>
module attributes {stable_mosaic.version = 11 : i64} {
  func.func @_cfg_editing_kernel(%arg0: i32, %arg1: memref<2xf32, #tpu.memory_space<smem>>, %arg2: memref<4x256xf32, #tpu.memory_space<vmem>>, %arg3: memref<4x256xf32, #tpu.memory_space<vmem>>, %arg4: memref<4x256xf32, #tpu.memory_space<vmem>>, %arg5: memref<4x4xf32, #tpu.memory_space<vmem>>, %arg6: memref<4x4xf32, #tpu.memory_space<vmem>>, %arg7: memref<4x1xf32, #tpu.memory_space<vmem>>, %arg8: memref<4x1xf32, #tpu.memory_space<vmem>>, %arg9: memref<4x256xf32, #tpu.memory_space<vmem>>) attributes {dimension_semantics = [#tpu.dimension_semantics<parallel>], iteration_bounds = array<i64: 1>, scalar_prefetch = 1 : i64, scratch_operands = 0 : i64, tpu.core_type = #tpu.core_type<tc>, window_params = [{transform_indices = @transform_0, window_bounds = array<i64: 4, 256>}, {transform_indices = @transform_1, window_bounds = array<i64: 4, 256>}, {transform_indices = @transform_2, window_bounds = array<i64: 4, 256>}, {pipeline_mode = #tpu.pipeline_mode<synchronous>, transform_indices = @transform_3, window_bounds = array<i64: 4, 4>}, {pipeline_mode = #tpu.pipeline_mode<synchronous>, transform_indices = @transform_4, window_bounds = array<i64: 4, 4>}, {pipeline_mode = #tpu.pipeline_mode<synchronous>, transform_indices = @transform_5, window_bounds = array<i64: 4, 1>}, {pipeline_mode = #tpu.pipeline_mode<synchronous>, transform_indices = @transform_6, window_bounds = array<i64: 4, 1>}, {transform_indices = @transform_7, window_bounds = array<i64: 4, 256>}]} {
    %c0 = arith.constant 0 : index
    %0 = memref.load %arg1[%c0] : memref<2xf32, #tpu.memory_space<smem>>
    %c1 = arith.constant 1 : index
    %1 = memref.load %arg1[%c1] : memref<2xf32, #tpu.memory_space<smem>>
    %c0_0 = arith.constant 0 : index
    %c0_1 = arith.constant 0 : index
    %2 = vector.load %arg2[%c0_0, %c0_1] : memref<4x256xf32, #tpu.memory_space<vmem>>, vector<4x256xf32>
    %c0_2 = arith.constant 0 : index
    %c0_3 = arith.constant 0 : index
    %3 = vector.load %arg3[%c0_2, %c0_3] : memref<4x256xf32, #tpu.memory_space<vmem>>, vector<4x256xf32>
    %c0_4 = arith.constant 0 : index
    %c0_5 = arith.constant 0 : index
    %4 = vector.load %arg4[%c0_4, %c0_5] : memref<4x256xf32, #tpu.memory_space<vmem>>, vector<4x256xf32>
    %c0_6 = arith.constant 0 : index
    %c0_7 = arith.constant 0 : index
    %5 = vector.load %arg5[%c0_6, %c0_7] : memref<4x4xf32, #tpu.memory_space<vmem>>, vector<4x4xf32>
    %cst = arith.constant dense<0.000000e+00> : vector<4x256xf32>
    %6 = tpu.matmul %5, %2, %cst {dimension_numbers = #tpu.dot_dimension_numbers<[1], [0], [0], [1], [0, 0, 1, 1], [], []>} : vector<4x4xf32>, vector<4x256xf32>, vector<4x256xf32> -> vector<4x256xf32>
    %c0_8 = arith.constant 0 : index
    %c0_9 = arith.constant 0 : index
    %7 = vector.load %arg7[%c0_8, %c0_9] : memref<4x1xf32, #tpu.memory_space<vmem>>, vector<4x1xf32>
    %c0_10 = arith.constant 0 : index
    %c0_11 = arith.constant 0 : index
    %8 = vector.load %arg6[%c0_10, %c0_11] : memref<4x4xf32, #tpu.memory_space<vmem>>, vector<4x4xf32>
    %cst_12 = arith.constant dense<0.000000e+00> : vector<4x256xf32>
    %9 = tpu.matmul %8, %3, %cst_12 {dimension_numbers = #tpu.dot_dimension_numbers<[1], [0], [0], [1], [0, 0, 1, 1], [], []>} : vector<4x4xf32>, vector<4x256xf32>, vector<4x256xf32> -> vector<4x256xf32>
    %10 = arith.addf %6, %9 : vector<4x256xf32>
    %11 = vector.broadcast %7 : vector<4x1xf32> to vector<4x256xf32>
    %12 = arith.addf %10, %11 : vector<4x256xf32>
    %c0_13 = arith.constant 0 : index
    %c0_14 = arith.constant 0 : index
    %13 = vector.load %arg6[%c0_13, %c0_14] : memref<4x4xf32, #tpu.memory_space<vmem>>, vector<4x4xf32>
    %cst_15 = arith.constant dense<0.000000e+00> : vector<4x256xf32>
    %14 = tpu.matmul %13, %4, %cst_15 {dimension_numbers = #tpu.dot_dimension_numbers<[1], [0], [0], [1], [0, 0, 1, 1], [], []>} : vector<4x4xf32>, vector<4x256xf32>, vector<4x256xf32> -> vector<4x256xf32>
    %15 = arith.addf %6, %14 : vector<4x256xf32>
    %16 = vector.broadcast %7 : vector<4x1xf32> to vector<4x256xf32>
    %17 = arith.addf %15, %16 : vector<4x256xf32>
    %18 = math.tanh %12 : vector<4x256xf32>
    %19 = math.tanh %17 : vector<4x256xf32>
    %20 = vector.broadcast %0 : f32 to vector<4x256xf32>
    %21 = arith.mulf %2, %20 : vector<4x256xf32>
    %22 = arith.addf %21, %19 : vector<4x256xf32>
    %23 = arith.subf %18, %19 : vector<4x256xf32>
    %24 = vector.broadcast %1 : f32 to vector<4x256xf32>
    %25 = arith.mulf %24, %23 : vector<4x256xf32>
    %26 = arith.addf %22, %25 : vector<4x256xf32>
    %c0_16 = arith.constant 0 : index
    %c0_17 = arith.constant 0 : index
    %27 = vector.load %arg8[%c0_16, %c0_17] : memref<4x1xf32, #tpu.memory_space<vmem>>, vector<4x1xf32>
    %28 = vector.broadcast %27 : vector<4x1xf32> to vector<4x256xf32>
    %29 = arith.addf %26, %28 : vector<4x256xf32>
    %c0_18 = arith.constant 0 : index
    %c0_19 = arith.constant 0 : index
    %30 = vector.load %arg9[%c0_18, %c0_19] : memref<4x256xf32, #tpu.memory_space<vmem>>, vector<4x256xf32>
    tpu.vector_store %arg9[%c0_18, %c0_19], %29 {strides = array<i32>} : memref<4x256xf32, #tpu.memory_space<vmem>>, vector<4x256xf32>,
    return
  }
  func.func @transform_0(%arg0: i32, %arg1: memref<2xf32, #tpu.memory_space<smem>>) -> (i32, i32) {
    %c0_i32 = arith.constant 0 : i32
    %c0_i32_0 = arith.constant 0 : i32
    return %c0_i32, %arg0 : i32, i32
  }
  func.func @transform_1(%arg0: i32, %arg1: memref<2xf32, #tpu.memory_space<smem>>) -> (i32, i32) {
    %c0_i32 = arith.constant 0 : i32
    %c0_i32_0 = arith.constant 0 : i32
    return %c0_i32, %arg0 : i32, i32
  }
  func.func @transform_2(%arg0: i32, %arg1: memref<2xf32, #tpu.memory_space<smem>>) -> (i32, i32) {
    %c0_i32 = arith.constant 0 : i32
    %c0_i32_0 = arith.constant 0 : i32
    return %c0_i32, %arg0 : i32, i32
  }
  func.func @transform_3(%arg0: i32, %arg1: memref<2xf32, #tpu.memory_space<smem>>) -> (i32, i32) {
    %c0_i32 = arith.constant 0 : i32
    %c0_i32_0 = arith.constant 0 : i32
    %c0_i32_1 = arith.constant 0 : i32
    return %c0_i32, %c0_i32_0 : i32, i32
  }
  func.func @transform_4(%arg0: i32, %arg1: memref<2xf32, #tpu.memory_space<smem>>) -> (i32, i32) {
    %c0_i32 = arith.constant 0 : i32
    %c0_i32_0 = arith.constant 0 : i32
    %c0_i32_1 = arith.constant 0 : i32
    return %c0_i32, %c0_i32_0 : i32, i32
  }
  func.func @transform_5(%arg0: i32, %arg1: memref<2xf32, #tpu.memory_space<smem>>) -> (i32, i32) {
    %c0_i32 = arith.constant 0 : i32
    %c0_i32_0 = arith.constant 0 : i32
    %c0_i32_1 = arith.constant 0 : i32
    return %c0_i32, %c0_i32_0 : i32, i32
  }
  func.func @transform_6(%arg0: i32, %arg1: memref<2xf32, #tpu.memory_space<smem>>) -> (i32, i32) {
    %c0_i32 = arith.constant 0 : i32
    %c0_i32_0 = arith.constant 0 : i32
    %c0_i32_1 = arith.constant 0 : i32
    return %c0_i32, %c0_i32_0 : i32, i32
  }
  func.func @transform_7(%arg0: i32, %arg1: memref<2xf32, #tpu.memory_space<smem>>) -> (i32, i32) {
    %c0_i32 = arith.constant 0 : i32
    %c0_i32_0 = arith.constant 0 : i32
    return %c0_i32, %arg0 : i32, i32
  }
}

</mosaic_0001>

<bundles_post_ra>
// kernel: tpu_custom_call.1
= control target key start
LH: loop header
LB: loop body
LE: loop exit
PB: predicated region body
PF: predicated region fallthrough
CT: control target
= control target key end

     0   :  { %s554_s0 = inlined_call_operand.hbm [shape: f32[2], index: 0, kind: input, shape index: {}]   ;;  %s555_s1 = inlined_call_operand.vmem [shape: f32[4,256], index: 1, kind: input, shape index: {}]   ;;  %s556_s2 = inlined_call_operand.vmem [shape: f32[4,256], index: 2, kind: input, shape index: {}]   ;;  %s557_s3 = inlined_call_operand.hbm [shape: f32[4,256], index: 3, kind: input, shape index: {}]   ;;  %s558_s4 = inlined_call_operand.vmem [shape: f32[4,4], index: 4, kind: input, shape index: {}]   ;;  %s559_s5 = inlined_call_operand.vmem [shape: f32[4,4], index: 5, kind: input, shape index: {}]   ;;  %s560_s6 = inlined_call_operand.vmem [shape: f32[4,1], index: 6, kind: input, shape index: {}]   ;;  %s561_s7 = inlined_call_operand.vmem [shape: f32[4,1], index: 7, kind: input, shape index: {}]   ;;  %s562_s8 = inlined_call_operand.hbm [shape: f32[4,256], index: 8, kind: output, shape index: {}]  }
   0x1   :  { %s383_s29 = scalar_lea.hbm %s554_s0, 16 }
   0x2   :  { %p384_p0 = scmp.ne.s32.totalorder %s554_s0, %s383_s29  ;;  %p387_p1 = scmp.lt.u32.totalorder %s383_s29, %s554_s0 }
   0x4   :  { %p389_p2 = pnand %p387_p1, %p384_p0 }
   0x6   :  { %392 = shalt.err (!%p389_p2)  }
   0x7   :  { %s443_s12 = smov [#allocation3]  }
   0x8   :  { %14 = dma.hbm_to_smem %s554_s0, 16, %s443_s12, [#allocation2] }
   0x9   :  { %437 = dma.done.wait [#allocation2], 16 }
   0xa   :  { %438 = vsyncadd [#allocation2], 4294967280 }
   0xb   :  { %16 = sfence }
   0xc   :  { %17 = vsyncpa [#allocation5], 0 }
   0xd   :  { %18 = vsyncpa [#allocation6], 0  ;;  %s444_s15 = smov [#allocation4]   ;;  %s393_s19 = scalar_lea.hbm %s557_s3, 128 }
   0xe   :  { %s29_s16 = sshll.u32 %s444_s15, 4  ;;  %p394_p3 = scmp.ne.s32.totalorder %s557_s3, %s393_s19  ;;  %s30_s16 = int_to_ptr.vmem [resolvable:$true] %s29_s16 }
   0xf   :  { %p397_p4 = scmp.lt.u32.totalorder %s393_s19, %s557_s3 }
  0x11   :  { %p399_p5 = pnand %p397_p4, %p394_p3 }
  0x13   :  { %402 = shalt.err (!%p399_p5)
}
  0x14   :  { %s403_s0 = scalar_lea.vmem %s30_s16, 128  ;;  %p408_p7 = scmp.lt.s32.totalorder %s30_s16, %s30_s16 }
  0x15   :  { %p404_p6 = scmp.ne.s32.totalorder %s30_s16, %s403_s0  ;;  %p409_p8 = scmp.lt.s32.totalorder %s403_s0, %s403_s0 }
  0x17   :  { %p410_p9 = por %p409_p8, %p408_p7 }
  0x19   :  { %p411_p10 = pnand %p410_p9, %p404_p6 }
  0x1b   :  { %414 = shalt.err (!%p411_p10)
}
  0x1c   :  { %32 = dma.hbm_to_vmem [thread:$0]  %s557_s3, 128, %s30_s16, [#allocation5]  }
  0x1d   :  { %439 = dma.done.wait [#allocation5], 128  }
  0x1e   :  { %440 = vsyncadd [#allocation5], 4294967168  ;;  %v445_v0 = vmov 0.0   ;;  %v446_v1 = vmov 0   ;;  %v46_v2 = vld [vmem:[%s555_s1] sm:$0xff]  ;;  %vm56_vm0 = vcmask 1043456   ;;  %v333_v29 = vlaneseq }
  0x1f   :  { %125 = vmatprep.mubr.f32.mxu0 %v445_v0  ;;  %207 = vmatprep.mubr.f32.mxu1 %v445_v0  ;;  %v47_v3 = vld [vmem:[%s556_s2] sm:$0xff]  ;;  %v51_v4 = vcombine.high %v46_v2, %v46_v2  ;;  %vm52_vm1 = vcmask 31744   ;;  %v447_v27 = vmov 839922192  }
  0x20   :  { %371 = vset.pattern.permute.xlu0 %v446_v1  ;;  %v135_v5 = vcombine.high %v47_v3, %v47_v3  ;;  %v48_v6 = vld [vmem:[#allocation4] sm:$0xff]  ;;  %v331_v28 = vunpack.c.l.s4 %v447_v27  ;;  %v334_v36 = vshrl.u32 %v333_v29, 7 }
  0x21   :  { %v132_v7 = vld [vmem:[%s560_s6] sm:$0xf]  ;;  %v224_v10 = vcombine.high %v48_v6, %v48_v6  ;;  %356 = vmatprep.subr.msk.mxu0 %vm56_vm0, %v51_v4  ;;  %s448_s6 = smov [#allocation7]  }
  0x22   :  { %v49_v8 = vld [vmem:[%s558_s4] sm:$0xf]  ;;  %218 = vperm.xlu0 %371, %v132_v7   ;;  %359 = vmatprep.subr.msk.mxu1 %vm56_vm0, %v135_v5  ;;  %s44_s4 = sld [smem:[#allocation3]]  ;;  %v332_v35 = vunpack.c.0.s8 %v331_v28 }
  0x23   :  { %v133_v9 = vld [vmem:[%s559_s5] sm:$0xf]  ;;  %357 = vmatpush1.msk.msra.mxu0 %vm56_vm0, %v46_v2  ;;  %360 = vmatpush1.msk.msra.mxu1 %vm56_vm0, %v47_v3  ;;  %s355_s5 = sld [smem:[#allocation3 + $0x1]] }
  0x24   :  { %v325_v11 = vld [vmem:[%s561_s7] sm:$0xf]  ;;  %358 = vmatmul.mubr.msk.f32.vlgmr.msra.gmra.mrb[0].mxu0 %vm52_vm1, %v49_v8  ;;  %361 = vmatmul.mubr.msk.f32.vlgmr.msra.gmra.mrb[0].mxu1 %vm52_vm1, %v133_v9  ;;  %v335_v43 = vsub.s32 %v332_v35, %v334_v36  ;;  %s346_s7 = sshll.u32 %s448_s6, 4  ;;  %s347_s7 = int_to_ptr.vmem [resolvable:$true] %s346_s7 }
  0x25   :  { %362 = vmatprep.subr.msk.mxu0 %vm56_vm0, %v224_v10  ;;  %293 = vmatprep.mubr.f32.mxu0 %v445_v0  ;;  %s415_s13 = scalar_lea.vmem %s347_s7, 128  ;;  %p420_p12 = scmp.lt.s32.totalorder %s347_s7, %s347_s7 }
  0x26   :  { %363 = vmatpush1.msk.msra.mxu0 %vm56_vm0, %v48_v6  ;;  %328 = vperm.xlu0 %371, %v325_v11   ;;  %p416_p11 = scmp.ne.s32.totalorder %s347_s7, %s415_s13  ;;  %p421_p13 = scmp.lt.s32.totalorder %s415_s13, %s415_s13 }
  0x28   :  { %364 = vmatmul.mubr.msk.f32.vlgmr.msra.gmra.mrb[2].mxu0 %vm52_vm1, %v133_v9  ;;  %v308_v30 = vstv %s44_s4  ;;  %p422_p0 = por %p421_p13, %p420_p12 }
  0x29   :  { %v309_v34 = vmul.f32 %v308_v30, %v46_v2  ;;  %v317_v37 = vstv %s355_s5 }
  0x2a   :  { %p423_p1 = pnand %p422_p0, %p416_p11 }
  0xa1   :  { %v219_v12 = vpop.permute.xlu0 %218 }
  0xa5   :  { %v329_v46 = vpop.permute.xlu0 %328 }
  0xa6   :  { %v336_v49 = vrot.slane %v329_v46, %v335_v43 }
  0xf7   :  { %v127_v13 = vpop.f32.mrb[0].mxu0  ;;  %v209_v14 = vpop.f32.mrb[0].mxu1 }
  0xf8   :  { %v214_v15 = vadd.f32 %v209_v14, %v127_v13  ;;  %v129_v16 = vpop.f32.mrb[1].mxu0  ;;  %v211_v17 = vpop.f32.mrb[1].mxu1 }
  0xf9   :  { %v215_v18 = vadd.f32 %v211_v17, %v129_v16 }
  0xfa   :  { %v221_v19 = vadd.f32 %v219_v12, %v214_v15 }
  0xfb   :  { %v222_v20 = vadd.f32 %v219_v12, %v215_v18  ;;  %v295_v21 = vpop.f32.mrb[2].mxu0 }
  0xfc   :  { %v300_v22 = vadd.f32 %v295_v21, %v127_v13  ;;  %v297_v23 = vpop.f32.mrb[3].mxu0  ;;  %375 = vtanh.f32 %v221_v19 }
  0xfd   :  { %v301_v24 = vadd.f32 %v297_v23, %v129_v16  ;;  %377 = vtanh.f32 %v222_v20 }
  0xfe   :  { %v302_v25 = vadd.f32 %v300_v22, %v219_v12 }
  0xff   :  { %v303_v26 = vadd.f32 %v301_v24, %v219_v12 }
 0x100   :  { %379 = vtanh.f32 %v302_v25 }
 0x101   :  { %381 = vtanh.f32 %v303_v26 }
 0x106   :  { %v376_v31 = vpop.eup %375 }
 0x107   :  { %v378_v32 = vpop.eup %377 }
 0x10a   :  { %v380_v33 = vpop.eup %379 }
 0x10b   :  { %v382_v38 = vpop.eup %381  ;;  %v315_v39 = vsub.f32 %v376_v31, %v380_v33 }
 0x10c   :  { %v312_v40 = vcombine.low %v380_v33, %v382_v38  ;;  %v316_v41 = vsub.f32 %v378_v32, %v382_v38 }
 0x10d   :  { %v318_v42 = vmul.f32 %v317_v37, %v315_v39 }
 0x10e   :  { %v314_v44 = vadd.f32 %v312_v40, %v309_v34  ;;  %v319_v45 = vmul.f32 %v317_v37, %v316_v41 }
 0x110   :  { %v322_v47 = vcombine.low %v318_v42, %v319_v45 }
 0x112   :  { %v324_v48 = vadd.f32 %v322_v47, %v314_v44 }
 0x114   :  { %v338_v50 = vadd.f32 %v336_v49, %v324_v48 }
 0x116   :  { %339 = vst [vmem:[#allocation7] sm:$0xff] %v338_v50 }
 0x117   :  { %426 = shalt.err (!%p423_p1)
}
 0x118   :  { %s427_s16 = scalar_lea.hbm %s562_s8, 128 }
 0x119   :  { %p428_p2 = scmp.ne.s32.totalorder %s562_s8, %s427_s16  ;;  %p431_p3 = scmp.lt.u32.totalorder %s427_s16, %s562_s8 }
 0x11b   :  { %p433_p4 = pnand %p431_p3, %p428_p2 }
 0x11d   :  { %436 = shalt.err (!%p433_p4)
}
 0x11e   :  { %349 = dma.vmem_to_hbm [thread:$0]  %s347_s7, 128, %s562_s8, [#allocation6]  }
 0x11f   :  { %441 = dma.done.wait [#allocation6], 128  }
 0x120   :  { %442 = vsyncadd [#allocation6], 4294967168 }
 0x121   :  { %353 = vsyncpa [#allocation5], 1 }
 0x122   :  { %354 = vsyncpa [#allocation6], 1 }

</bundles_post_ra>
